<compile_context>
chip_gen: v7x
topology: tpu7x:2x2x1
jax: 0.10.0
libtpu: 0.0.40
codegen_flags: <defaults>
</compile_context>

<pallas_src>
import functools

import jax
import jax.numpy as jnp
from jax.experimental import pallas as pl
from jax.experimental.pallas import tpu as pltpu

LANES = 128


def _round_up(x: int, m: int) -> int:
    return (x + m - 1) // m * m


def _round_down(x: int, m: int) -> int:
    return x // m * m


def _row_granule(dtype) -> int:
    # Sublane packing: 8 rows for 4-byte dtypes, 16 for 2-byte, 32 for 1-byte.
    return max(8, 32 // max(1, jnp.dtype(dtype).itemsize))


@functools.lru_cache(maxsize=None)
def _device_kind() -> str:
    try:
        return jax.devices()[0].device_kind.lower()
    except Exception:
        return ""


def _tpu_generation() -> int:
    kind = _device_kind()
    if "v7" in kind or "7x" in kind:
        return 7
    for gen in (6, 5, 4, 3, 2):
        if f"v{gen}" in kind:
            return gen
    return 0  # unknown -> conservative defaults


def _tpu_parallel_cores() -> int:
    # TensorCores a ("parallel",) grid axis is sharded across:
    # v7x -> 2 TCs/chip; v4 / v5p megacore -> 2; v5e / v6e -> 1.
    kind = _device_kind()
    gen = _tpu_generation()
    if gen >= 7 or gen == 4:
        return 2
    if gen == 5 and "lite" not in kind and "5e" not in kind:
        return 2
    return 1


def _target_block_bytes(gen: int) -> int:
    # Bigger blocks amortize the ~0.35us/grid-step cost; sized to each
    # generation's HBM bandwidth.  v5e & older pinned at 2 MiB (already ~93%
    # amortized at 0.82 TB/s, and its default scoped VMEM is only 16 MiB).
    if gen >= 7:
        return 6 << 20
    if gen == 6:
        return 4 << 20
    return 2 << 20


def _lambda_kernel(x_ref, o_ref, *, func, compute_dtype):
    x = x_ref[...]
    if compute_dtype is not None and x.dtype != compute_dtype:
        x = x.astype(compute_dtype)
    o_ref[...] = func(x).astype(o_ref.dtype)


def make_pallas_lambda(func):
    """Returns a callable equivalent to Lambda(func).forward."""

    def forward(x):
        orig_shape = x.shape
        in_dtype = x.dtype
        n = x.size

        if n == 0:
            return func(x)  # empty input: nothing to stream

        # The Pallas path requires a shape-preserving elementwise func.
        try:
            full_probe = jax.eval_shape(
                func, jax.ShapeDtypeStruct(x.shape, in_dtype))
            tile_probe = jax.eval_shape(
                func, jax.ShapeDtypeStruct((8, LANES), in_dtype))
            elementwise = (full_probe.shape == tuple(x.shape)
                           and tile_probe.shape == (8, LANES))
        except Exception:
            elementwise = False
        if not elementwise:
            # TODO(synk): non-elementwise funcs bypass the Pallas path.
            return func(x)

        out_dtype = full_probe.dtype
        gen = _tpu_generation()
        ncores = _tpu_parallel_cores()
        target_block_bytes = _target_block_bytes(gen)

        # Pre-v6 chips have no bf16 VPU/EUP: compute sub-32-bit floats in f32.
        # v6e/v7x compute natively (keeps exp/recip-heavy funcs DMA-bound).
        compute_dtype = (
            jnp.float32
            if (0 < gen <= 5
                and jnp.issubdtype(in_dtype, jnp.floating)
                and jnp.dtype(in_dtype).itemsize < 4)
            else None
        )

        in_item = jnp.dtype(in_dtype).itemsize
        out_item = jnp.dtype(out_dtype).itemsize
        itemsize = max(in_item, out_item)

        flat = x.reshape(-1)  # metadata-only for a dense row-major array

        if n % LANES == 0:
            # Common case: lane-dense (rows, 128) slab, zero extra HBM copies.
            rows = n // LANES
            slab = flat.reshape(rows, LANES)
            granule = max(_row_granule(in_dtype), _row_granule(out_dtype))
            if rows <= granule:
                block_rows = rows                       # block == full extent
            else:
                max_rows = max(
                    granule,
                    (target_block_bytes // (LANES * itemsize)) // granule * granule,
                )
                # Block count is a multiple of the parallel-core count so both
                # TCs on v7x / megacore chips get (nearly) equal work.
                nblocks = ncores * pl.cdiv(rows, ncores * max_rows)
                block_rows = min(
                    _round_up(pl.cdiv(rows, nblocks), granule),
                    _round_down(rows, granule),
                )
            block_shape = (block_rows, LANES)
            index_map = lambda i: (i, 0)
            grid_n = pl.cdiv(rows, block_rows)
        else:
            # Unaligned size: view as (1, n); Pallas masks the ragged last
            # block.  No jnp.pad / out[:n] full-array copies.  Pad lanes read
            # garbage and may produce inf/NaN inside func; they are discarded
            # by the masked store, so results are unaffected.
            slab = flat.reshape(1, n)
            if n < LANES:
                block_cols = n                          # block == full extent
            else:
                max_cols = max(
                    LANES, (target_block_bytes // itemsize) // LANES * LANES
                )
                nblocks = ncores * pl.cdiv(n, ncores * max_cols)
                block_cols = min(
                    _round_up(pl.cdiv(n, nblocks), LANES),
                    _round_down(n, LANES),
                )
            block_shape = (1, block_cols)
            index_map = lambda i: (0, i)
            grid_n = pl.cdiv(n, block_cols)

        # Double-buffered in + out, plus headroom for Mosaic internal scratch.
        block_elems = block_shape[0] * block_shape[1]
        needed = 2 * block_elems * (in_item + out_item)
        vmem_limit = min(64 << 20, max(needed + (8 << 20), 16 << 20))

        kernel = functools.partial(
            _lambda_kernel, func=func, compute_dtype=compute_dtype
        )
        out_slab = pl.pallas_call(
            kernel,
            out_shape=jax.ShapeDtypeStruct(slab.shape, out_dtype),
            grid_spec=pltpu.PrefetchScalarGridSpec(
                num_scalar_prefetch=0,
                grid=(grid_n,),
                in_specs=[pl.BlockSpec(block_shape, index_map)],
                out_specs=pl.BlockSpec(block_shape, index_map),
            ),
            compiler_params=pltpu.CompilerParams(
                dimension_semantics=("parallel",),
                vmem_limit_bytes=vmem_limit,
            ),
            # Advisory: lets XLA overlap the custom call inside larger jits.
            cost_estimate=pl.CostEstimate(
                flops=4 * n,
                transcendentals=n,
                bytes_accessed=n * (in_item + out_item),
            ),
        )(slab)

        return out_slab.reshape(orig_shape)

    # jit lets XLA elide the flatten/reshape metadata ops around the kernel.
    return jax.jit(forward)


if __name__ == "__main__":
    # Representative func for Lambda: elementwise SiLU, x * sigmoid(x).
    func = lambda v: v * jax.nn.sigmoid(v)
    pallas_lambda = make_pallas_lambda(func)

    key = jax.random.PRNGKey(0)
    k1, k2, k3, k4 = jax.random.split(key, 4)

    # Primary example: NCHW [2, 4, 16, 16] (size multiple of 128 -> slab path).
    x1 = jax.random.normal(k1, (2, 4, 16, 16), dtype=jnp.float32)
    out1 = jax.block_until_ready(pallas_lambda(x1))
    ref1 = func(x1)
    assert out1.shape == x1.shape and out1.dtype == ref1.dtype
    assert jnp.allclose(out1, ref1, atol=1e-6, rtol=1e-6)

    # Multi-block grid (rows=8192 -> even block split on 2-TC chips).
    x2 = jax.random.normal(k2, (4, 64, 64, 64), dtype=jnp.float32)
    out2 = jax.block_until_ready(pallas_lambda(x2))
    assert jnp.allclose(out2, func(x2), atol=1e-6, rtol=1e-6)

    # Awkward size (not a multiple of 128): copy-free (1, n) ragged path.
    x3 = jax.random.normal(k3, (3, 5, 7, 11), dtype=jnp.float32)
    out3 = jax.block_until_ready(pallas_lambda(x3))
    assert jnp.allclose(out3, func(x3), atol=1e-6, rtol=1e-6)

    # bf16 input: native bf16 compute on v6e/v7x, f32 upcast on older chips.
    x4 = jax.random.normal(k4, (2, 4, 16, 16), dtype=jnp.bfloat16)
    out4 = jax.block_until_ready(pallas_lambda(x4))
    ref4 = func(x4)
    assert out4.shape == x4.shape and out4.dtype == ref4.dtype
    assert jnp.allclose(out4.astype(jnp.float32), ref4.astype(jnp.float32),
                        atol=2e-2, rtol=2e-2)

    print("KERNEL_OK")
</pallas_src>

<mosaic_0001>
module attributes {stable_mosaic.version = 11 : i64} {
  func.func @_lambda_kernel(%arg0: i32, %arg1: memref<16x128xf32, #tpu.memory_space<vmem>>, %arg2: memref<16x128xf32, #tpu.memory_space<vmem>>) attributes {dimension_semantics = [#tpu.dimension_semantics<parallel>], iteration_bounds = array<i64: 1>, scalar_prefetch = 0 : i64, scratch_operands = 0 : i64, tpu.core_type = #tpu.core_type<tc>, window_params = [{transform_indices = @transform_0, window_bounds = array<i64: 16, 128>}, {transform_indices = @transform_1, window_bounds = array<i64: 16, 128>}]} {
    %c0 = arith.constant 0 : index
    %c0_0 = arith.constant 0 : index
    %0 = vector.load %arg1[%c0, %c0_0] : memref<16x128xf32, #tpu.memory_space<vmem>>, vector<16x128xf32>
    %1 = arith.negf %0 : vector<16x128xf32>
    %2 = math.exp %1 : vector<16x128xf32>
    %cst = arith.constant 1.000000e+00 : f32
    %3 = vector.broadcast %cst : f32 to vector<16x128xf32>
    %4 = arith.addf %3, %2 : vector<16x128xf32>
    %5 = arith.divf %3, %4 : vector<16x128xf32>
    %6 = arith.mulf %0, %5 : vector<16x128xf32>
    %c0_1 = arith.constant 0 : index
    %c0_2 = arith.constant 0 : index
    %7 = vector.load %arg2[%c0_1, %c0_2] : memref<16x128xf32, #tpu.memory_space<vmem>>, vector<16x128xf32>
    tpu.vector_store %arg2[%c0_1, %c0_2], %6 {strides = array<i32>} : memref<16x128xf32, #tpu.memory_space<vmem>>, vector<16x128xf32>,
    return
  }
  func.func @transform_0(%arg0: i32) -> (i32, i32) {
    %c0_i32 = arith.constant 0 : i32
    %c0_i32_0 = arith.constant 0 : i32
    return %arg0, %c0_i32 : i32, i32
  }
  func.func @transform_1(%arg0: i32) -> (i32, i32) {
    %c0_i32 = arith.constant 0 : i32
    %c0_i32_0 = arith.constant 0 : i32
    return %arg0, %c0_i32 : i32, i32
  }
}

</mosaic_0001>

<bundles_post_ra>
// kernel: forward.1
= control target key start
LH: loop header
LB: loop body
LE: loop exit
PB: predicated region body
PF: predicated region fallthrough
CT: control target
= control target key end

     0   :  { %s62_s0 = inlined_call_operand.vmem [shape: f32[16,128], index: 0, kind: input, shape index: {}]   ;;  %s63_s1 = inlined_call_operand.vmem [shape: f32[16,128], index: 1, kind: output, shape index: {}]  }
   0x1   :  { %v8_v0 = vld [vmem:[%s62_s0] sm:$0xff]  ;;  %v9_v1 = vld [vmem:[%s62_s0 + $0x8] sm:$0xff] }
   0x2   :  { %v30_v2 = vmul.f32 -1.442695, %v8_v0  ;;  %v31_v3 = vmul.f32 -1.442695, %v9_v1 }
   0x4   :  { %32 = vpow2.f32 %v30_v2 }
   0x5   :  { %34 = vpow2.f32 %v31_v3 }
   0xe   :  { %v33_v4 = vpop.eup %32 }
   0xf   :  { %v35_v5 = vpop.eup %34  ;;  %v16_v6 = vadd.f32 1.0, %v33_v4 }
  0x10   :  { %v17_v7 = vadd.f32 1.0, %v35_v5 }
  0x11   :  { %36 = vrcp.f32 %v16_v6 }
  0x12   :  { %38 = vrcp.f32 %v17_v7 }
  0x1b   :  { %v37_v8 = vpop.eup %36 }
  0x1c   :  { %v39_v9 = vpop.eup %38  ;;  %v22_v10 = vmul.f32 %v37_v8, %v8_v0 }
  0x1d   :  { %v23_v11 = vmul.f32 %v39_v9, %v9_v1 }
  0x1e   :  { %24 = vst [vmem:[%s63_s1] sm:$0xff] %v22_v10 }
  0x1f   :  { %25 = vst [vmem:[%s63_s1 + $0x8] sm:$0xff] %v23_v11 }

</bundles_post_ra>
